<compile_context>
chip_gen: v7x
topology: tpu7x:2x2x1
jax: 0.10.0
libtpu: 0.0.40
codegen_flags: <defaults>
</compile_context>

<pallas_src>
import functools

import numpy as np

import jax
import jax.numpy as jnp
from jax import lax
from jax.experimental import pallas as pl
from jax.experimental.pallas import tpu as pltpu


def _pick_pack_factor(H, W):
    """Row-packing factor k (k consecutive input rows per 'super-row').

    Chosen so the output block width 4*k*W is a multiple of 128 lanes
    (lane-dense stores) when W is small; k must divide H.  k = 1 for W >= 32."""
    if W >= 32:
        return 1
    fallback = 1
    for k in range(2, min(H, 64) + 1):
        if H % k:
            continue
        if (k * W) % 32 == 0:
            return k
        if fallback == 1 and k * W >= 32:
            fallback = k
    return fallback


def _make_interp_matrices(W, k):
    """Constant matrices for TF-style 2x bilinear upsampling of k packed rows.

    M1: (k*W, 4*k*W) weights on the packed super-row [x[i], ..., x[i+k-1]].
    M2: (W,   4*k*W) weights on the 'row below' operand (row i+k, replicate-
                     clamped at the plane's bottom row).
    Output super-row layout (length 4*k*W):
        [ y[2i] | y[2i+1] | ... | y[2i+2k-1] ]   (each 2*W wide)
    which is exactly the row-major layout of the (2H, 2W) output plane."""
    kW = k * W
    M1 = np.zeros((kW, 4 * kW), np.float32)
    M2 = np.zeros((W, 4 * kW), np.float32)
    for t in range(k):
        even = 4 * t * W          # columns of output row 2(i+t)
        odd = even + 2 * W        # columns of output row 2(i+t)+1
        for j in range(W):
            jp = min(j + 1, W - 1)            # replicate-clamped right neighbour
            r, rp = t * W + j, t * W + jp
            # even output row: out[2i,2j] = x[i,j]; out[2i,2j+1] = (x[i,j]+x[i,jp])/2
            M1[r, even + 2 * j] += 1.0
            M1[r, even + 2 * j + 1] += 0.5
            M1[rp, even + 2 * j + 1] += 0.5
            # odd output row:  out[2i+1,2j]   = (x[i,j] + below[j]) / 2
            #                  out[2i+1,2j+1] = (x[i,j] + below[jp]) / 2
            M1[r, odd + 2 * j] += 0.5
            M1[r, odd + 2 * j + 1] += 0.5
            if t + 1 < k:                     # 'below' is still inside the super-row
                M1[(t + 1) * W + j, odd + 2 * j] += 0.5
                M1[(t + 1) * W + jp, odd + 2 * j + 1] += 0.5
            else:                             # 'below' is the separate down operand
                M2[j, odd + 2 * j] += 0.5
                M2[jp, odd + 2 * j + 1] += 0.5
    return M1, M2


def _pick_planes_per_block(N, rows_per_plane, row_live_bytes, budget_bytes):
    """Planes (N = B*C) per grid step.  Prefers blocks whose row count is a
    multiple of 8, >= 4 grid steps (>= 2 per TensorCore on v7x megacore), and the
    largest block that fits the VMEM budget."""
    divisors = [d for d in range(1, N + 1) if N % d == 0]
    aligned = [d for d in divisors if (d * rows_per_plane) % 8 == 0]
    if not aligned:
        return N                      # single full-array block is always a legal shape
    max_rows = max(1, budget_bytes // max(row_live_bytes, 1))
    fits = [d for d in aligned if d * rows_per_plane <= max_rows]
    if not fits:
        # TODO(synk): sub-plane (row-level) blocking with a 1-row halo when even a
        # single plane exceeds the VMEM budget (very large H*W on v7x).
        return min(aligned)
    if N >= 4:
        multi = [d for d in fits if N // d >= 4]
        if multi:
            return max(multi)
    return max(fits)


def _upsample_rows_kernel(rows_per_plane, W, k, x_ref, m1_ref, m2_ref, o_ref):
    # x_ref : (rows, k*W)   packed input super-rows (whole planes per block)
    # o_ref : (rows, 4*k*W) fully interleaved output super-rows (lane-dense)
    xf = x_ref[...].astype(jnp.float32)
    rows = xf.shape[0]

    # 'Row below' operand: first row (W lanes) of the next super-row; at each
    # plane's last super-row replicate the plane's bottom row (its last W lanes).
    nxt = jnp.concatenate([xf[1:, :W], xf[rows - 1:, :W]], axis=0)
    bottom = xf[:, (k - 1) * W:]
    ridx = lax.broadcasted_iota(jnp.int32, (rows, 1), 0)
    plane_last = (ridx % rows_per_plane) == (rows_per_plane - 1)
    xd = jnp.where(plane_last, bottom, nxt)                      # (rows, W)

    # Exact 3-way bf16 split (v == hi + mid + lo bit-exactly for normal-range f32),
    # so plain single-pass bf16 MXU matmuls with f32 accumulation reproduce the
    # f32 result: every matrix entry (0, 0.5, 1.0) is exact in bf16.  This has the
    # MXU cost of Precision.HIGH (3 passes) at Precision.HIGHEST accuracy.
    def dot3(v, m):
        hi = v.astype(jnp.bfloat16)
        r = v - hi.astype(jnp.float32)
        mid = r.astype(jnp.bfloat16)
        lo = (r - mid.astype(jnp.float32)).astype(jnp.bfloat16)
        acc = jnp.dot(hi, m, preferred_element_type=jnp.float32)
        acc += jnp.dot(mid, m, preferred_element_type=jnp.float32)
        acc += jnp.dot(lo, m, preferred_element_type=jnp.float32)
        return acc

    o_ref[...] = dot3(xf, m1_ref[...]) + dot3(xd, m2_ref[...])


def upsample_2x_bilinear_tf(x):
    """x: (B, C, H, W) -> (B, C, 2H, 2W) float32, TF-style 2x bilinear upsample."""
    B, C, H, W = x.shape
    N = B * C
    xf32 = x.astype(jnp.float32)            # reference produces a float32 output

    k = _pick_pack_factor(H, W)
    kW = k * W
    rpp = H // k                            # super-rows per plane
    total_rows = N * rpp

    M1, M2 = _make_interp_matrices(W, k)
    m1 = jnp.asarray(M1, dtype=jnp.bfloat16)   # entries {0, 0.5, 1.0} -> exact cast
    m2 = jnp.asarray(M2, dtype=jnp.bfloat16)
    const_bytes = (M1.size + M2.size) * 2

    # --- VMEM budgeting (constants + double-buffered data blocks + temporaries) ---
    try:
        phys_vmem = int(pltpu.get_tpu_info().vmem_capacity_bytes)
    except Exception:
        phys_vmem = 64 * 1024 * 1024        # v7x-safe default

    def pad128(n):
        return -(-n // 128) * 128

    in_row = pad128(kW) * 4
    out_row = pad128(4 * kW) * 4
    # 2x double-buffered in/out blocks, plus in-kernel temporaries (bf16 splits,
    # residuals, partial matmul results) estimated generously per super-row.
    row_live = 2 * (in_row + out_row) + 6 * in_row + 2 * out_row
    budget = max(0, phys_vmem * 3 // 4 - 2 * const_bytes - (4 << 20))

    c_blk = _pick_planes_per_block(N, rpp, row_live, budget)
    rows_per_block = c_blk * rpp
    num_blocks = N // c_blk

    need = 2 * const_bytes + rows_per_block * row_live + (8 << 20)
    vmem_limit = int(min(max(need, 32 << 20), max(32 << 20, phys_vmem - (4 << 20))))

    x_rows = xf32.reshape(total_rows, kW)   # free row-major reshape

    flops = 2 * total_rows * 3 * (kW + W) * (4 * kW)        # 6 bf16 matmul passes
    bytes_accessed = 4 * total_rows * (kW + 4 * kW) + const_bytes

    out_flat = pl.pallas_call(
        functools.partial(_upsample_rows_kernel, rpp, W, k),
        out_shape=jax.ShapeDtypeStruct((total_rows, 4 * kW), jnp.float32),
        grid=(num_blocks,),
        in_specs=[
            pl.BlockSpec((rows_per_block, kW), lambda i: (i, 0)),
            pl.BlockSpec((kW, 4 * kW), lambda i: (0, 0)),    # resident constants
            pl.BlockSpec((W, 4 * kW), lambda i: (0, 0)),
        ],
        out_specs=pl.BlockSpec((rows_per_block, 4 * kW), lambda i: (i, 0)),
        compiler_params=pltpu.CompilerParams(
            dimension_semantics=("parallel",),
            vmem_limit_bytes=vmem_limit,
        ),
        cost_estimate=pl.CostEstimate(
            flops=flops, transcendentals=0, bytes_accessed=bytes_accessed),
    )(x_rows, m1, m2)

    # Free row-major reshape: super-row u holds output rows [2*k*u_loc .. +2k-1].
    return out_flat.reshape(B, C, 2 * H, 2 * W)


def _reference_jax(x):
    """Pure-JAX reference mirroring tf_2xupsample_bilinear (the PyTorch spec)."""
    x = x.astype(jnp.float32)
    x_down = jnp.concatenate([x[:, :, 1:, :], x[:, :, -1:, :]], axis=2)
    x_right = jnp.concatenate([x[:, :, :, 1:], x[:, :, :, -1:]], axis=3)
    x_diag = jnp.concatenate([x_down[:, :, :, 1:], x_down[:, :, :, -1:]], axis=3)
    B, C, H, W = x.shape
    out = jnp.zeros((B, C, 2 * H, 2 * W), jnp.float32)
    out = out.at[:, :, ::2, ::2].set(x)
    out = out.at[:, :, 1::2, ::2].set((x + x_down) * 0.5)
    out = out.at[:, :, ::2, 1::2].set((x + x_right) * 0.5)
    out = out.at[:, :, 1::2, 1::2].set((x + x_diag) * 0.5)
    return out


if __name__ == "__main__":
    key = jax.random.PRNGKey(0)
    B, C, H, W = 2, 4, 16, 16
    x = jax.random.normal(key, (B, C, H, W), dtype=jnp.float32)

    fn = jax.jit(upsample_2x_bilinear_tf)
    y = jax.block_until_ready(fn(x))

    y_ref = _reference_jax(x)
    assert y.shape == (B, C, 2 * H, 2 * W)
    assert y.dtype == jnp.float32
    assert jnp.allclose(y, y_ref, atol=1e-5, rtol=1e-5), float(jnp.max(jnp.abs(y - y_ref)))
    print("KERNEL_OK")
</pallas_src>

<mosaic_0001>
module attributes {stable_mosaic.version = 11 : i64} {
  func.func @_upsample_rows_kernel(%arg0: i32, %arg1: memref<16x32xf32, #tpu.memory_space<vmem>>, %arg2: memref<32x128xbf16, #tpu.memory_space<vmem>>, %arg3: memref<16x128xbf16, #tpu.memory_space<vmem>>, %arg4: memref<16x128xf32, #tpu.memory_space<vmem>>) attributes {dimension_semantics = [#tpu.dimension_semantics<parallel>], iteration_bounds = array<i64: 4>, scalar_prefetch = 0 : i64, scratch_operands = 0 : i64, tpu.core_type = #tpu.core_type<tc>, window_params = [{transform_indices = @transform_0, window_bounds = array<i64: 16, 32>}, {pipeline_mode = #tpu.pipeline_mode<synchronous>, transform_indices = @transform_1, window_bounds = array<i64: 32, 128>}, {pipeline_mode = #tpu.pipeline_mode<synchronous>, transform_indices = @transform_2, window_bounds = array<i64: 16, 128>}, {transform_indices = @transform_3, window_bounds = array<i64: 16, 128>}]} {
    %c0 = arith.constant 0 : index
    %c0_0 = arith.constant 0 : index
    %0 = vector.load %arg1[%c0, %c0_0] : memref<16x32xf32, #tpu.memory_space<vmem>>, vector<16x32xf32>
    %1 = vector.extract_strided_slice %0 {offsets = [1, 0], sizes = [15, 16], strides = [1, 1]} : vector<16x32xf32> to vector<15x16xf32>
    %2 = vector.extract_strided_slice %0 {offsets = [15, 0], sizes = [1, 16], strides = [1, 1]} : vector<16x32xf32> to vector<1x16xf32>
    %3 = tpu.concatenate %1, %2 in 0 : vector<15x16xf32>, vector<1x16xf32> -> vector<16x16xf32>
    %4 = vector.extract_strided_slice %0 {offsets = [0, 16], sizes = [16, 16], strides = [1, 1]} : vector<16x32xf32> to vector<16x16xf32>
    %5 = tpu.iota {dimensions = array<i32: 0>} : vector<16x1xi32>
    %c8_i32 = arith.constant 8 : i32
    %c0_i32 = arith.constant 0 : i32
    %6 = arith.cmpi eq, %c8_i32, %c0_i32 : i32
    %c1_i32 = arith.constant 1 : i32
    %7 = arith.select %6, %c1_i32, %c8_i32 : i32
    %8 = vector.broadcast %7 : i32 to vector<16x1xi32>
    %9 = arith.remsi %5, %8 : vector<16x1xi32>
    %c0_i32_1 = arith.constant 0 : i32
    %10 = vector.broadcast %c0_i32_1 : i32 to vector<16x1xi32>
    %11 = arith.cmpi ne, %9, %10 : vector<16x1xi32>
    %c0_i32_2 = arith.constant 0 : i32
    %12 = vector.broadcast %c0_i32_2 : i32 to vector<16x1xi32>
    %13 = arith.cmpi slt, %9, %12 : vector<16x1xi32>
    %c0_i32_3 = arith.constant 0 : i32
    %14 = arith.cmpi slt, %7, %c0_i32_3 : i32
    %15 = vector.broadcast %14 : i1 to vector<16x1xi1>
    %16 = vector.broadcast %15 : vector<16x1xi1> to vector<16x1xi1>
    %17 = arith.xori %13, %16 : vector<16x1xi1>
    %18 = arith.andi %17, %11 : vector<16x1xi1>
    %19 = vector.broadcast %7 : i32 to vector<16x1xi32>
    %20 = arith.addi %9, %19 : vector<16x1xi32>
    %21 = arith.select %18, %20, %9 : vector<16x1xi1>, vector<16x1xi32>
    %c7_i32 = arith.constant 7 : i32
    %22 = vector.broadcast %c7_i32 : i32 to vector<16x1xi32>
    %23 = arith.cmpi eq, %21, %22 : vector<16x1xi32>
    %24 = vector.shape_cast %23 : vector<16x1xi1> to vector<16x1xi1>
    %25 = vector.broadcast %24 : vector<16x1xi1> to vector<16x16xi1>
    %26 = arith.select %25, %4, %3 : vector<16x16xi1>, vector<16x16xf32>
    %c0_4 = arith.constant 0 : index
    %c0_5 = arith.constant 0 : index
    %27 = vector.load %arg2[%c0_4, %c0_5] : memref<32x128xbf16, #tpu.memory_space<vmem>>, vector<32x128xbf16>
    %28 = arith.truncf %0 : vector<16x32xf32> to vector<16x32xbf16>
    %29 = arith.extf %28 : vector<16x32xbf16> to vector<16x32xf32>
    %30 = arith.subf %0, %29 : vector<16x32xf32>
    %31 = arith.truncf %30 : vector<16x32xf32> to vector<16x32xbf16>
    %32 = arith.extf %31 : vector<16x32xbf16> to vector<16x32xf32>
    %33 = arith.subf %30, %32 : vector<16x32xf32>
    %34 = arith.truncf %33 : vector<16x32xf32> to vector<16x32xbf16>
    %cst = arith.constant dense<0.000000e+00> : vector<16x128xf32>
    %35 = tpu.matmul %28, %27, %cst {dimension_numbers = #tpu.dot_dimension_numbers<[1], [0], [0], [1], [0, 0, 1, 1], [], []>} : vector<16x32xbf16>, vector<32x128xbf16>, vector<16x128xf32> -> vector<16x128xf32>
    %cst_6 = arith.constant dense<0.000000e+00> : vector<16x128xf32>
    %36 = tpu.matmul %31, %27, %cst_6 {dimension_numbers = #tpu.dot_dimension_numbers<[1], [0], [0], [1], [0, 0, 1, 1], [], []>} : vector<16x32xbf16>, vector<32x128xbf16>, vector<16x128xf32> -> vector<16x128xf32>
    %37 = arith.addf %35, %36 : vector<16x128xf32>
    %cst_7 = arith.constant dense<0.000000e+00> : vector<16x128xf32>
    %38 = tpu.matmul %34, %27, %cst_7 {dimension_numbers = #tpu.dot_dimension_numbers<[1], [0], [0], [1], [0, 0, 1, 1], [], []>} : vector<16x32xbf16>, vector<32x128xbf16>, vector<16x128xf32> -> vector<16x128xf32>
    %39 = arith.addf %37, %38 : vector<16x128xf32>
    %c0_8 = arith.constant 0 : index
    %c0_9 = arith.constant 0 : index
    %40 = vector.load %arg3[%c0_8, %c0_9] : memref<16x128xbf16, #tpu.memory_space<vmem>>, vector<16x128xbf16>
    %41 = arith.truncf %26 : vector<16x16xf32> to vector<16x16xbf16>
    %42 = arith.extf %41 : vector<16x16xbf16> to vector<16x16xf32>
    %43 = arith.subf %26, %42 : vector<16x16xf32>
    %44 = arith.truncf %43 : vector<16x16xf32> to vector<16x16xbf16>
    %45 = arith.extf %44 : vector<16x16xbf16> to vector<16x16xf32>
    %46 = arith.subf %43, %45 : vector<16x16xf32>
    %47 = arith.truncf %46 : vector<16x16xf32> to vector<16x16xbf16>
    %cst_10 = arith.constant dense<0.000000e+00> : vector<16x128xf32>
    %48 = tpu.matmul %41, %40, %cst_10 {dimension_numbers = #tpu.dot_dimension_numbers<[1], [0], [0], [1], [0, 0, 1, 1], [], []>} : vector<16x16xbf16>, vector<16x128xbf16>, vector<16x128xf32> -> vector<16x128xf32>
    %cst_11 = arith.constant dense<0.000000e+00> : vector<16x128xf32>
    %49 = tpu.matmul %44, %40, %cst_11 {dimension_numbers = #tpu.dot_dimension_numbers<[1], [0], [0], [1], [0, 0, 1, 1], [], []>} : vector<16x16xbf16>, vector<16x128xbf16>, vector<16x128xf32> -> vector<16x128xf32>
    %50 = arith.addf %48, %49 : vector<16x128xf32>
    %cst_12 = arith.constant dense<0.000000e+00> : vector<16x128xf32>
    %51 = tpu.matmul %47, %40, %cst_12 {dimension_numbers = #tpu.dot_dimension_numbers<[1], [0], [0], [1], [0, 0, 1, 1], [], []>} : vector<16x16xbf16>, vector<16x128xbf16>, vector<16x128xf32> -> vector<16x128xf32>
    %52 = arith.addf %50, %51 : vector<16x128xf32>
    %53 = arith.addf %39, %52 : vector<16x128xf32>
    %c0_13 = arith.constant 0 : index
    %c0_14 = arith.constant 0 : index
    %54 = vector.load %arg4[%c0_13, %c0_14] : memref<16x128xf32, #tpu.memory_space<vmem>>, vector<16x128xf32>
    tpu.vector_store %arg4[%c0_13, %c0_14], %53 {strides = array<i32>} : memref<16x128xf32, #tpu.memory_space<vmem>>, vector<16x128xf32>,
    return
  }
  func.func @transform_0(%arg0: i32) -> (i32, i32) {
    %c0_i32 = arith.constant 0 : i32
    %c0_i32_0 = arith.constant 0 : i32
    return %arg0, %c0_i32 : i32, i32
  }
  func.func @transform_1(%arg0: i32) -> (i32, i32) {
    %c0_i32 = arith.constant 0 : i32
    %c0_i32_0 = arith.constant 0 : i32
    %c0_i32_1 = arith.constant 0 : i32
    return %c0_i32, %c0_i32_0 : i32, i32
  }
  func.func @transform_2(%arg0: i32) -> (i32, i32) {
    %c0_i32 = arith.constant 0 : i32
    %c0_i32_0 = arith.constant 0 : i32
    %c0_i32_1 = arith.constant 0 : i32
    return %c0_i32, %c0_i32_0 : i32, i32
  }
  func.func @transform_3(%arg0: i32) -> (i32, i32) {
    %c0_i32 = arith.constant 0 : i32
    %c0_i32_0 = arith.constant 0 : i32
    return %arg0, %c0_i32 : i32, i32
  }
}

</mosaic_0001>

<bundles_post_ra>
// kernel: upsample_2x_bilinear_tf.1
= control target key start
LH: loop header
LB: loop body
LE: loop exit
PB: predicated region body
PF: predicated region fallthrough
CT: control target
= control target key end

     0   :  { %s754_s12 = smov 0   ;;  %s816_s0 = inlined_call_operand.vmem [shape: f32[64,32], index: 0, kind: input, shape index: {}]   ;;  %s817_s1 = inlined_call_operand.vmem [shape: bf16[32,128], index: 1, kind: input, shape index: {}]   ;;  %s818_s2 = inlined_call_operand.vmem [shape: bf16[16,128], index: 2, kind: input, shape index: {}]   ;;  %s819_s3 = inlined_call_operand.vmem [shape: f32[64,128], index: 3, kind: output, shape index: {}]  }
   0x1 LB: > { %s612_s13 = sadd.s32 4294967295, %s728_s12   ;;  %p616_p0 = scmp.ge.s32.totalorder %s728_s12, 1  ;;  %s728_s12 = sphi %s754_s12, %s13_s12  }
   0x2   : > { %p138_p1 = scmp.lt.s32.totalorder %s728_s12, 5 }
   0x4   : > { %p139_p2 = pnand %p616_p0, %p138_p1 }
   0x5   : > { %s617_s14 = sshll.u32 (!%p139_p2), %s612_s13, 1  ;;  %vm179_vm0 = vcmask (!%p139_p2), 1046528   ;;  %s730_s19 = smov (!%p139_p2), 16   ;;  %v719_v7 = vld [vmem:[%s817_s1] sm:$0xff] (!%p139_p2)   ;;  %v731_v11 = vmov (!%p139_p2), 0.0   ;;  %vm732_vm1 = vmmov (!%p139_p2), 0   ;;  %v185_v21 = vlaneseq (!%p139_p2) }
   0x6   : > { %142 = sbr.rel (%p139_p2) target bundleno = 504 (0x1f8), region = 32  ;;  %p163_p3 = scmp.lt.s32.totalorder (!%p139_p2), %s617_s14, 7  ;;  %v776_v10 = vld [vmem:[%s818_s2] sm:$0xff] (!%p139_p2)   ;;  %647 = vmatprep.subr.bf16.mxu1 (!%p139_p2), %v731_v11  ;;  %651 = vmatprep.mubr.msk.bf16.mxu1 (!%p139_p2), %vm732_vm1, %v731_v11  ;;  %v720_v12 = vld [vmem:[%s817_s1 + $0x8] sm:$0xff] (!%p139_p2)   ;;  %vm254_vm2 = vcmask (!%p139_p2), 261120   ;;  %vm411_vm5 = vcmask (!%p139_p2), 130048  }
   0x7   : > { %648 = vmatpush3.bf16.msra.mxu1 (!%p139_p2), %v719_v7  ;;  %671 = vmatprep.subr.bf16.mxu0 (!%p139_p2), %v731_v11  ;;  %v186_v22 = vshrl.u32 (!%p139_p2), %v185_v21, 7  ;;  %s733_s26 = smov (!%p139_p2), 112  }
   0x8   : > { %649 = vmatprep.subr.bf16.mxu1 (!%p139_p2), %v731_v11  ;;  %672 = vmatpush3.bf16.msra.mxu0 (!%p139_p2), %v776_v10 }
   0x9   : > { %673 = vmatprep.mubr.msk.bf16.mxu0 (!%p139_p2), %vm732_vm1, %v731_v11  ;;  %677 = vmatprep.subr.bf16.mxu0 (!%p139_p2), %v731_v11  ;;  %v187_v23 = vadd.s32 (!%p139_p2), 8, %v186_v22  ;;  %v192_v24 = vand.u32 (!%p139_p2), 7, %v186_v22 }
   0xb   : > { %650 = vmatpush3.bf16.msra.mxu1 (!%p139_p2), %v720_v12  ;;  %v199_v25 = vand.u32 (!%p139_p2), 7, %v187_v23  ;;  %vm212_vm3 = vcmp.eq.s32.totalorder (!%p139_p2), %v192_v24, 7 }
   0xc   : > { %655 = vmatprep.subr.bf16.mxu1 (!%p139_p2), %v731_v11 }
   0xd   : > { %s821_s14 = smov (!%p163_p3, %s617_s14), 7  ;;  %vm213_vm4 = vcmp.eq.s32.totalorder %v199_v25, 7 }
   0xe   : > { %s618_s15 = sshll.u32 %s821_s14, 3 }
   0xf   : > { %s166_s18 = scalar_lea.vmem %s816_s0, %s618_s15  ;;  %s172_s29 = scalar_lea.vmem %s819_s3, %s618_s15 }
  0x10   : > { %v175_v0 = vld [vmem:[%s166_s18] sm:$0xff]  ;;  %v176_v1 = vld [vmem:[%s166_s18 + $0x8] sm:$0xff] }
  0x11   : > { %v180_v2 = vrot.slane %v175_v0, 1  ;;  %v181_v3 = vrot.slane %v176_v1, 1  ;;  %v231_v6 = vpack.c.bf16 %v176_v1, %v175_v0 }
  0x13   : > { %v182_v4 = vsel %vm179_vm0, %v180_v2, %v181_v3  ;;  %v184_v5 = vsel %vm179_vm0, %v181_v3, %v176_v1  ;;  %v232_v8 = vunpack.c.l.bf16 %v231_v6  ;;  %v233_v9 = vunpack.c.h.bf16 %v231_v6 }
  0x14   : > { %219 = vrot.lane.b32.xlu0 %v182_v4, %s730_s19 }
  0x15   : > { %v234_v13 = vsub.f32 %v175_v0, %v232_v8  ;;  %v235_v14 = vsub.f32 %v176_v1, %v233_v9 }
  0x17   : > { %v236_v15 = vpack.c.bf16 %v235_v14, %v234_v13 }
  0x18   : > { %221 = vrot.lane.b32.xlu0 %v184_v5, %s730_s19 }
  0x19   : > { %652 = vmatmul.mubr.msk.bf16.vlgmr.msra.gmra.mrb[0].mxu1 %vm254_vm2, %v236_v15  ;;  %v237_v16 = vunpack.c.l.bf16 %v236_v15  ;;  %v238_v17 = vunpack.c.h.bf16 %v236_v15 }
  0x1a   : > { %656 = vmatpush3.bf16.msra.mxu1 %v719_v7  ;;  %659 = vmatprep.mubr.msk.bf16.mxu1 %vm732_vm1, %v731_v11 }
  0x1b   : > { %657 = vmatprep.subr.bf16.mxu1 %v731_v11  ;;  %v239_v18 = vsub.f32 %v234_v13, %v237_v16  ;;  %v240_v19 = vsub.f32 %v235_v14, %v238_v17 }
  0x1d   : > { %v241_v20 = vpack.c.bf16 %v240_v19, %v239_v18 }
  0x1e   : > { %658 = vmatpush3.bf16.msra.mxu1 %v720_v12 }
  0x1f   : > { %663 = vmatprep.subr.bf16.mxu1 %v731_v11 }
  0x25   : > { %660 = vmatmul.mubr.msk.bf16.vlgmr.msra.gmra.mrb[0].mxu1 %vm254_vm2, %v231_v6 }
  0x26   : > { %664 = vmatpush3.bf16.msra.mxu1 %v719_v7  ;;  %667 = vmatprep.mubr.msk.bf16.mxu1 %vm732_vm1, %v731_v11 }
  0x27   : > { %665 = vmatprep.subr.bf16.mxu1 %v731_v11 }
  0x2a   : > { %666 = vmatpush3.bf16.msra.mxu1 %v720_v12 }
  0x31   : > { %668 = vmatmul.mubr.msk.bf16.vlgmr.msra.gmra.mrb[0].mxu1 %vm254_vm2, %v241_v20 }
  0x86   : > { %v220_v26 = vpop.permute.xlu0 %219 }
  0x87   : > { %v225_v28 = vsel %vm212_vm3, %v175_v0, %v220_v26 }
  0x8a   : > { %v222_v27 = vpop.permute.xlu0 %221 }
  0x8b   : > { %v226_v29 = vsel %vm213_vm4, %v176_v1, %v222_v27 }
  0x8c   : > { %v391_v30 = vpack.c.bf16 %v226_v29, %v225_v28 }
  0x8e   : > { %v392_v31 = vunpack.c.l.bf16 %v391_v30  ;;  %v393_v32 = vunpack.c.h.bf16 %v391_v30 }
  0x90   : > { %v395_v33 = vsub.f32 %v226_v29, %v393_v32  ;;  %v394_v34 = vsub.f32 %v225_v28, %v392_v31 }
  0x92   : > { %v396_v35 = vpack.c.bf16 %v395_v33, %v394_v34 }
  0x94   : > { %403 = vrot.lane.b32.xlu1 %v396_v35, %s733_s26  ;;  %v397_v36 = vunpack.c.l.bf16 %v396_v35  ;;  %v398_v37 = vunpack.c.h.bf16 %v396_v35 }
  0x96   : > { %v399_v38 = vsub.f32 %v394_v34, %v397_v36  ;;  %v400_v39 = vsub.f32 %v395_v33, %v398_v37 }
  0x98   : > { %457 = vrot.lane.b32.xlu1 %v391_v30, %s733_s26  ;;  %v401_v40 = vpack.c.bf16 %v400_v39, %v399_v38 }
  0x9a   : > { %504 = vrot.lane.b32.xlu0 %v401_v40, %s733_s26 }
 0x104   : > { %v380_v42 = vpop.f32.mrb[0].mxu1 }
 0x105   : > { %v669_v43 = vpop.f32.mrb[1].mxu1 }
 0x106   : > { %v404_v41 = vpop.permute.xlu1 %403  ;;  %v383_v44 = vpop.f32.mrb[2].mxu1 }
 0x107   : > { %674 = vmatmul.mubr.msk.bf16.vlgmr.msra.gmra.mrb[0].mxu0 %vm411_vm5, %v404_v41  ;;  %v670_v45 = vpop.f32.mrb[3].mxu1 }
 0x108   : > { %678 = vmatpush3.bf16.msra.mxu0 %v776_v10  ;;  %679 = vmatprep.mubr.msk.bf16.mxu0 %vm732_vm1, %v731_v11 }
 0x109   : > { %683 = vmatprep.subr.bf16.mxu0 %v731_v11 }
 0x10a   : > { %v458_v46 = vpop.permute.xlu1 %457 }
 0x10c   : > { %v505_v47 = vpop.permute.xlu0 %504 }
 0x113   : > { %680 = vmatmul.mubr.msk.bf16.vlgmr.msra.gmra.mrb[0].mxu0 %vm411_vm5, %v458_v46 }
 0x114   : > { %684 = vmatpush3.bf16.msra.mxu0 %v776_v10  ;;  %685 = vmatprep.mubr.msk.bf16.mxu0 %vm732_vm1, %v731_v11 }
 0x11f   : > { %686 = vmatmul.mubr.msk.bf16.vlgmr.msra.gmra.mrb[0].mxu0 %vm411_vm5, %v505_v47 }
 0x1f2   : > { %v543_v48 = vpop.f32.mrb[0].mxu0 }
 0x1f3   : > { %v689_v49 = vadd.f32 %v543_v48, %v380_v42  ;;  %v687_v50 = vpop.f32.mrb[1].mxu0 }
 0x1f4   : > { %v546_v51 = vpop.f32.mrb[2].mxu0 }
 0x1f5   : > { %554 = vst [vmem:[%s172_s29] sm:$0xff] %v689_v49  ;;  %v690_v52 = vadd.f32 %v546_v51, %v383_v44  ;;  %v688_v53 = vpop.f32.mrb[3].mxu0 }
 0x1f7   : > { %555 = vst [vmem:[%s172_s29 + $0x8] sm:$0xff] %v690_v52 }
 0x1f8 PF: > { %s13_s12 = sadd.s32 1, %s728_s12  }
 0x1f9   : > { %p10_p4 = scmp.ge.s32.totalorder %s13_s12, 6  }
 0x1fb   :  { %12 = sbr.rel (!%p10_p4) target bundleno = 1 (0x1), region = 62 }

</bundles_post_ra>
